<compile_context>
chip_gen: v7x
topology: tpu7x:2x2x1
jax: 0.10.0
libtpu: 0.0.40
codegen_flags: <defaults>
</compile_context>

<pallas_src>
import functools

import jax
import jax.numpy as jnp
from jax.experimental import pallas as pl
from jax.experimental.pallas import tpu as pltpu


def _round_up(x, m):
    return (x + m - 1) // m * m


def _generation_kernel(x_ref, w1_ref, b1_ref, w2_ref, b2_ref, o_ref,
                       h_ref, m_ref, l_ref, *, tn):
    """Fused fc1 -> relu -> fc2 (N-tiled) -> online log_softmax."""
    j = pl.program_id(1)
    nj = pl.num_programs(1)

    # fc1 + relu once per row tile; init the online-logsumexp state.
    @pl.when(j == 0)
    def _():
        h = jnp.dot(x_ref[...], w1_ref[...],
                    preferred_element_type=jnp.float32)
        h = jnp.maximum(h + b1_ref[...], 0.0)
        # dropout: identity (eval mode)
        h_ref[...] = h.astype(h_ref.dtype)
        m_ref[...] = jnp.full_like(m_ref, -jnp.inf)
        l_ref[...] = jnp.zeros_like(l_ref)

    # fc2 for this vocab column block (bf16 operands, f32 accumulation).
    logits = jnp.dot(h_ref[...], w2_ref[...],
                     preferred_element_type=jnp.float32) + b2_ref[...]

    # Stash raw logits into the resident output block (lane-aligned store).
    col0 = pl.multiple_of(j * tn, tn)
    o_ref[:, pl.ds(col0, tn)] = logits

    # Online (running-max, rescaled-sum) logsumexp accumulation.
    m_prev = m_ref[...]
    m_new = jnp.maximum(m_prev, jnp.max(logits, axis=-1, keepdims=True))
    l_ref[...] = l_ref[...] * jnp.exp(m_prev - m_new) + jnp.sum(
        jnp.exp(logits - m_new), axis=-1, keepdims=True)
    m_ref[...] = m_new

    # Last vocab block: normalize the whole row in place.
    @pl.when(j == nj - 1)
    def _():
        lse = m_ref[...] + jnp.log(l_ref[...])
        o_ref[...] = o_ref[...] - lse


@functools.partial(jax.jit, static_argnames=("tm", "tn"))
def generation_forward(x, w1, b1, w2, b2, *, tm=256, tn=512):
    """x: (batch, seq, dim_model) -> (batch, seq, n_vocab) log-probs.

    tm: row tile (use 128 on v5e, 256 on v6e/v7x).
    tn: fc2 output-column tile (multiple of 128; 128 on v5e is enough).
    """
    batch, seq, dim_model = x.shape
    n_vocab = w1.shape[1]
    M = batch * seq

    # ---- tile / padding geometry ------------------------------------------
    assert tn % 128 == 0, "tn must be a multiple of 128"
    tm_eff = min(tm, _round_up(M, 8))          # shrink tile for tiny inputs
    m_pad = _round_up(M, tm_eff)

    v128 = _round_up(n_vocab, 128)
    tn_eff = min(tn, v128)
    v_pad = v128 if v128 % tn_eff == 0 else _round_up(n_vocab, tn_eff)

    # ---- cast to bf16 operands, pad to tile boundaries ---------------------
    x2d = x.reshape(M, dim_model).astype(jnp.bfloat16)
    x2d = jnp.pad(x2d, ((0, m_pad - M), (0, 0)))
    w1p = jnp.pad(w1.astype(jnp.bfloat16), ((0, 0), (0, v_pad - n_vocab)))
    w2p = jnp.pad(w2.astype(jnp.bfloat16),
                  ((0, v_pad - n_vocab), (0, v_pad - n_vocab)))
    b1p = jnp.pad(b1.astype(jnp.float32),
                  (0, v_pad - n_vocab)).reshape(1, v_pad)
    # Padded logit columns get a huge negative bias so exp() ~ 0 in the lse.
    b2p = jnp.pad(b2.astype(jnp.float32), (0, v_pad - n_vocab),
                  constant_values=-1e30).reshape(1, v_pad)

    grid = (m_pad // tm_eff, v_pad // tn_eff)

    # ---- scheduler hints ----------------------------------------------------
    flops = 2 * m_pad * dim_model * v_pad + 2 * m_pad * v_pad * v_pad
    bytes_accessed = (x2d.size * 2 + w1p.size * 2 + w2p.size * 2
                      + b1p.size * 4 + b2p.size * 4 + m_pad * v_pad * 4)

    # VMEM budget: double-buffered inputs/outputs + scratch, with headroom.
    vmem_bytes = (
        2 * tm_eff * dim_model * 2        # x tile (bf16)
        + 2 * dim_model * v_pad * 2       # w1 (bf16, constant index)
        + 2 * v_pad * 4                   # b1 (f32)
        + 2 * v_pad * tn_eff * 2          # w2 column block (bf16)
        + 2 * tn_eff * 4                  # b2 block (f32)
        + 2 * tm_eff * v_pad * 4          # output block (f32)
        + tm_eff * v_pad * 2              # h scratch (bf16)
        + 4 * tm_eff * 4                  # m/l scratch
    )
    vmem_limit = min(max(int(vmem_bytes * 1.5) + (4 << 20), 32 << 20),
                     96 << 20)            # v7x physical VMEM is 64 MiB/TC

    kernel = functools.partial(_generation_kernel, tn=tn_eff)

    out2d = pl.pallas_call(
        kernel,
        out_shape=jax.ShapeDtypeStruct((m_pad, v_pad), jnp.float32),
        grid_spec=pltpu.PrefetchScalarGridSpec(
            num_scalar_prefetch=0,
            grid=grid,
            in_specs=[
                pl.BlockSpec((tm_eff, dim_model), lambda i, j: (i, 0)),  # x
                pl.BlockSpec((dim_model, v_pad), lambda i, j: (0, 0)),   # w1
                pl.BlockSpec((1, v_pad), lambda i, j: (0, 0)),           # b1
                pl.BlockSpec((v_pad, tn_eff), lambda i, j: (0, j)),      # w2
                pl.BlockSpec((1, tn_eff), lambda i, j: (0, j)),          # b2
            ],
            out_specs=pl.BlockSpec((tm_eff, v_pad), lambda i, j: (i, 0)),
            scratch_shapes=[
                pltpu.VMEM((tm_eff, v_pad), jnp.bfloat16),   # h (relu(fc1))
                pltpu.VMEM((tm_eff, 1), jnp.float32),        # running max
                pltpu.VMEM((tm_eff, 1), jnp.float32),        # running sum-exp
            ],
        ),
        compiler_params=pltpu.CompilerParams(
            dimension_semantics=("parallel", "arbitrary"),
            vmem_limit_bytes=int(vmem_limit),
        ),
        cost_estimate=pl.CostEstimate(
            flops=int(flops),
            transcendentals=int(m_pad * v_pad),
            bytes_accessed=int(bytes_accessed),
        ),
    )(x2d, w1p, b1p, w2p, b2p)

    return out2d[:M, :n_vocab].reshape(batch, seq, n_vocab)


def init_params(key, dim_model, n_vocab):
    """Deterministic PyTorch-style Linear init: U(-1/sqrt(fan_in), ...)."""
    k1, k2, k3, k4 = jax.random.split(key, 4)
    bound1 = 1.0 / (dim_model ** 0.5)
    bound2 = 1.0 / (n_vocab ** 0.5)
    # Stored transposed relative to PyTorch: (in_features, out_features).
    w1 = jax.random.uniform(k1, (dim_model, n_vocab), jnp.float32, -bound1, bound1)
    b1 = jax.random.uniform(k2, (n_vocab,), jnp.float32, -bound1, bound1)
    w2 = jax.random.uniform(k3, (n_vocab, n_vocab), jnp.float32, -bound2, bound2)
    b2 = jax.random.uniform(k4, (n_vocab,), jnp.float32, -bound2, bound2)
    return w1, b1, w2, b2


if __name__ == "__main__":
    # Small shapes consistent with the module's forward.  n_vocab=200 is not a
    # multiple of 128, which exercises the vocab-padding / masked-lse path.
    batch, seq, dim_model, n_vocab = 2, 8, 32, 200
    prob_dropout = 0.1  # unused at eval time

    key = jax.random.PRNGKey(0)
    kx, kp = jax.random.split(key)
    x = jax.random.normal(kx, (batch, seq, dim_model), dtype=jnp.float32)
    w1, b1, w2, b2 = init_params(kp, dim_model, n_vocab)

    # tn=128 at this toy vocab so the demo exercises the multi-block
    # online-logsumexp path (grid j-extent 2); default tn=512 is for real vocabs.
    out = generation_forward(x, w1, b1, w2, b2, tn=128)
    jax.block_until_ready(out)

    # Plain-JAX reference with matching precision (bf16 operands, f32 accum).
    xb = x.reshape(-1, dim_model).astype(jnp.bfloat16)
    h_ref = jnp.maximum(
        jnp.dot(xb, w1.astype(jnp.bfloat16),
                preferred_element_type=jnp.float32) + b1, 0.0)
    logits_ref = jnp.dot(h_ref.astype(jnp.bfloat16), w2.astype(jnp.bfloat16),
                         preferred_element_type=jnp.float32) + b2
    ref = jax.nn.log_softmax(logits_ref, axis=-1).reshape(batch, seq, n_vocab)

    assert out.shape == (batch, seq, n_vocab)
    assert bool(jnp.all(jnp.isfinite(out))), "non-finite values in output"
    max_err = float(jnp.max(jnp.abs(out - ref)))
    assert jnp.allclose(out, ref, atol=2e-2, rtol=2e-2), f"mismatch: {max_err}"

    print("KERNEL_OK")
</pallas_src>

<mosaic_0001>
module attributes {stable_mosaic.version = 11 : i64} {
  func.func @_generation_kernel(%arg0: i32, %arg1: i32, %arg2: memref<16x32xbf16, #tpu.memory_space<vmem>>, %arg3: memref<32x256xbf16, #tpu.memory_space<vmem>>, %arg4: memref<1x256xf32, #tpu.memory_space<vmem>>, %arg5: memref<256x128xbf16, #tpu.memory_space<vmem>>, %arg6: memref<1x128xf32, #tpu.memory_space<vmem>>, %arg7: memref<16x256xf32, #tpu.memory_space<vmem>>, %arg8: memref<16x256xbf16, #tpu.memory_space<vmem>>, %arg9: memref<16x1xf32, #tpu.memory_space<vmem>>, %arg10: memref<16x1xf32, #tpu.memory_space<vmem>>) attributes {dimension_semantics = [#tpu.dimension_semantics<parallel>, #tpu.dimension_semantics<arbitrary>], iteration_bounds = array<i64: 1, 2>, scalar_prefetch = 0 : i64, scratch_operands = 3 : i64, tpu.core_type = #tpu.core_type<tc>, window_params = [{transform_indices = @transform_0, window_bounds = array<i64: 16, 32>}, {pipeline_mode = #tpu.pipeline_mode<synchronous>, transform_indices = @transform_1, window_bounds = array<i64: 32, 256>}, {pipeline_mode = #tpu.pipeline_mode<synchronous>, transform_indices = @transform_2, window_bounds = array<i64: 1, 256>}, {transform_indices = @transform_3, window_bounds = array<i64: 256, 128>}, {transform_indices = @transform_4, window_bounds = array<i64: 1, 128>}, {transform_indices = @transform_5, window_bounds = array<i64: 16, 256>}]} {
    %c0_i32 = arith.constant 0 : i32
    %0 = arith.cmpi eq, %arg1, %c0_i32 : i32
    %1 = arith.extui %0 : i1 to i32
    %c0_i32_0 = arith.constant 0 : i32
    %2 = arith.cmpi ne, %1, %c0_i32_0 : i32
    scf.if %2 {
      %c0_18 = arith.constant 0 : index
      %c0_19 = arith.constant 0 : index
      %32 = vector.load %arg2[%c0_18, %c0_19] : memref<16x32xbf16, #tpu.memory_space<vmem>>, vector<16x32xbf16>
      %c0_20 = arith.constant 0 : index
      %c0_21 = arith.constant 0 : index
      %33 = vector.load %arg3[%c0_20, %c0_21] : memref<32x256xbf16, #tpu.memory_space<vmem>>, vector<32x256xbf16>
      %cst_22 = arith.constant dense<0.000000e+00> : vector<16x256xf32>
      %34 = tpu.matmul %32, %33, %cst_22 {dimension_numbers = #tpu.dot_dimension_numbers<[1], [0], [0], [1], [0, 0, 1, 1], [], []>} : vector<16x32xbf16>, vector<32x256xbf16>, vector<16x256xf32> -> vector<16x256xf32>
      %c0_23 = arith.constant 0 : index
      %c0_24 = arith.constant 0 : index
      %35 = vector.load %arg4[%c0_23, %c0_24] : memref<1x256xf32, #tpu.memory_space<vmem>>, vector<1x256xf32>
      %36 = vector.broadcast %35 : vector<1x256xf32> to vector<16x256xf32>
      %37 = arith.addf %34, %36 : vector<16x256xf32>
      %cst_25 = arith.constant 0.000000e+00 : f32
      %38 = vector.broadcast %cst_25 : f32 to vector<16x256xf32>
      %39 = arith.maximumf %37, %38 : vector<16x256xf32>
      %40 = arith.truncf %39 : vector<16x256xf32> to vector<16x256xbf16>
      %c0_26 = arith.constant 0 : index
      %c0_27 = arith.constant 0 : index
      %41 = vector.load %arg8[%c0_26, %c0_27] : memref<16x256xbf16, #tpu.memory_space<vmem>>, vector<16x256xbf16>
      tpu.vector_store %arg8[%c0_26, %c0_27], %40 {strides = array<i32>} : memref<16x256xbf16, #tpu.memory_space<vmem>>, vector<16x256xbf16>,
      %cst_28 = arith.constant 0xFF800000 : f32
      %42 = vector.broadcast %cst_28 : f32 to vector<16x1xf32>
      %c0_29 = arith.constant 0 : index
      %c0_30 = arith.constant 0 : index
      %43 = vector.load %arg9[%c0_29, %c0_30] : memref<16x1xf32, #tpu.memory_space<vmem>>, vector<16x1xf32>
      tpu.vector_store %arg9[%c0_29, %c0_30], %42 {strides = array<i32>} : memref<16x1xf32, #tpu.memory_space<vmem>>, vector<16x1xf32>,
      %cst_31 = arith.constant 0.000000e+00 : f32
      %44 = vector.broadcast %cst_31 : f32 to vector<16x1xf32>
      %c0_32 = arith.constant 0 : index
      %c0_33 = arith.constant 0 : index
      %45 = vector.load %arg10[%c0_32, %c0_33] : memref<16x1xf32, #tpu.memory_space<vmem>>, vector<16x1xf32>
      tpu.vector_store %arg10[%c0_32, %c0_33], %44 {strides = array<i32>} : memref<16x1xf32, #tpu.memory_space<vmem>>, vector<16x1xf32>,
    } else {
    }
    %c0 = arith.constant 0 : index
    %c0_1 = arith.constant 0 : index
    %3 = vector.load %arg8[%c0, %c0_1] : memref<16x256xbf16, #tpu.memory_space<vmem>>, vector<16x256xbf16>
    %c0_2 = arith.constant 0 : index
    %c0_3 = arith.constant 0 : index
    %4 = vector.load %arg5[%c0_2, %c0_3] : memref<256x128xbf16, #tpu.memory_space<vmem>>, vector<256x128xbf16>
    %cst = arith.constant dense<0.000000e+00> : vector<16x128xf32>
    %5 = tpu.matmul %3, %4, %cst {dimension_numbers = #tpu.dot_dimension_numbers<[1], [0], [0], [1], [0, 0, 1, 1], [], []>} : vector<16x256xbf16>, vector<256x128xbf16>, vector<16x128xf32> -> vector<16x128xf32>
    %c0_4 = arith.constant 0 : index
    %c0_5 = arith.constant 0 : index
    %6 = vector.load %arg6[%c0_4, %c0_5] : memref<1x128xf32, #tpu.memory_space<vmem>>, vector<1x128xf32>
    %7 = vector.broadcast %6 : vector<1x128xf32> to vector<16x128xf32>
    %8 = arith.addf %5, %7 : vector<16x128xf32>
    %c128_i32 = arith.constant 128 : i32
    %9 = arith.muli %arg1, %c128_i32 : i32
    %10 = tpu.assume_multiple %9, 128 : i32
    %c0_6 = arith.constant 0 : index
    %11 = arith.index_cast %10 : i32 to index
    %12 = vector.load %arg7[%c0_6, %11] : memref<16x256xf32, #tpu.memory_space<vmem>>, vector<16x128xf32>
    tpu.vector_store %arg7[%c0_6, %11], %8 {strides = array<i32>} : memref<16x256xf32, #tpu.memory_space<vmem>>, vector<16x128xf32>,
    %c0_7 = arith.constant 0 : index
    %c0_8 = arith.constant 0 : index
    %13 = vector.load %arg9[%c0_7, %c0_8] : memref<16x1xf32, #tpu.memory_space<vmem>>, vector<16x1xf32>
    %cst_9 = arith.constant dense<0xFF800000> : vector<16xf32>
    %14 = vector.multi_reduction <maximumf>, %8, %cst_9 [1] : vector<16x128xf32> to vector<16xf32>
    %15 = vector.shape_cast %14 : vector<16xf32> to vector<16x1xf32>
    %16 = arith.maximumf %13, %15 : vector<16x1xf32>
    %c0_10 = arith.constant 0 : index
    %c0_11 = arith.constant 0 : index
    %17 = vector.load %arg10[%c0_10, %c0_11] : memref<16x1xf32, #tpu.memory_space<vmem>>, vector<16x1xf32>
    %18 = arith.subf %13, %16 : vector<16x1xf32>
    %19 = math.exp %18 : vector<16x1xf32>
    %20 = arith.mulf %17, %19 : vector<16x1xf32>
    %21 = vector.broadcast %16 : vector<16x1xf32> to vector<16x128xf32>
    %22 = arith.subf %8, %21 : vector<16x128xf32>
    %23 = math.exp %22 : vector<16x128xf32>
    %cst_12 = arith.constant dense<0.000000e+00> : vector<16xf32>
    %24 = vector.multi_reduction <add>, %23, %cst_12 [1] : vector<16x128xf32> to vector<16xf32>
    %25 = vector.shape_cast %24 : vector<16xf32> to vector<16x1xf32>
    %26 = arith.addf %20, %25 : vector<16x1xf32>
    %c0_13 = arith.constant 0 : index
    %c0_14 = arith.constant 0 : index
    %27 = vector.load %arg10[%c0_13, %c0_14] : memref<16x1xf32, #tpu.memory_space<vmem>>, vector<16x1xf32>
    tpu.vector_store %arg10[%c0_13, %c0_14], %26 {strides = array<i32>} : memref<16x1xf32, #tpu.memory_space<vmem>>, vector<16x1xf32>,
    %c0_15 = arith.constant 0 : index
    %c0_16 = arith.constant 0 : index
    %28 = vector.load %arg9[%c0_15, %c0_16] : memref<16x1xf32, #tpu.memory_space<vmem>>, vector<16x1xf32>
    tpu.vector_store %arg9[%c0_15, %c0_16], %16 {strides = array<i32>} : memref<16x1xf32, #tpu.memory_space<vmem>>, vector<16x1xf32>,
    %c1_i32 = arith.constant 1 : i32
    %29 = arith.cmpi eq, %arg1, %c1_i32 : i32
    %30 = arith.extui %29 : i1 to i32
    %c0_i32_17 = arith.constant 0 : i32
    %31 = arith.cmpi ne, %30, %c0_i32_17 : i32
    scf.if %31 {
      %c0_18 = arith.constant 0 : index
      %c0_19 = arith.constant 0 : index
      %32 = vector.load %arg9[%c0_18, %c0_19] : memref<16x1xf32, #tpu.memory_space<vmem>>, vector<16x1xf32>
      %c0_20 = arith.constant 0 : index
      %c0_21 = arith.constant 0 : index
      %33 = vector.load %arg10[%c0_20, %c0_21] : memref<16x1xf32, #tpu.memory_space<vmem>>, vector<16x1xf32>
      %34 = math.log %33 : vector<16x1xf32>
      %35 = arith.addf %32, %34 : vector<16x1xf32>
      %c0_22 = arith.constant 0 : index
      %c0_23 = arith.constant 0 : index
      %36 = vector.load %arg7[%c0_22, %c0_23] : memref<16x256xf32, #tpu.memory_space<vmem>>, vector<16x256xf32>
      %37 = vector.broadcast %35 : vector<16x1xf32> to vector<16x256xf32>
      %38 = arith.subf %36, %37 : vector<16x256xf32>
      %c0_24 = arith.constant 0 : index
      %c0_25 = arith.constant 0 : index
      %39 = vector.load %arg7[%c0_24, %c0_25] : memref<16x256xf32, #tpu.memory_space<vmem>>, vector<16x256xf32>
      tpu.vector_store %arg7[%c0_24, %c0_25], %38 {strides = array<i32>} : memref<16x256xf32, #tpu.memory_space<vmem>>, vector<16x256xf32>,
    } else {
    }
    return
  }
  func.func @transform_0(%arg0: i32, %arg1: i32) -> (i32, i32) {
    %c0_i32 = arith.constant 0 : i32
    %c0_i32_0 = arith.constant 0 : i32
    return %arg0, %c0_i32 : i32, i32
  }
  func.func @transform_1(%arg0: i32, %arg1: i32) -> (i32, i32) {
    %c0_i32 = arith.constant 0 : i32
    %c0_i32_0 = arith.constant 0 : i32
    %c0_i32_1 = arith.constant 0 : i32
    return %c0_i32, %c0_i32_0 : i32, i32
  }
  func.func @transform_2(%arg0: i32, %arg1: i32) -> (i32, i32) {
    %c0_i32 = arith.constant 0 : i32
    %c0_i32_0 = arith.constant 0 : i32
    %c0_i32_1 = arith.constant 0 : i32
    return %c0_i32, %c0_i32_0 : i32, i32
  }
  func.func @transform_3(%arg0: i32, %arg1: i32) -> (i32, i32) {
    %c0_i32 = arith.constant 0 : i32
    %c0_i32_0 = arith.constant 0 : i32
    return %c0_i32, %arg1 : i32, i32
  }
  func.func @transform_4(%arg0: i32, %arg1: i32) -> (i32, i32) {
    %c0_i32 = arith.constant 0 : i32
    %c0_i32_0 = arith.constant 0 : i32
    return %c0_i32, %arg1 : i32, i32
  }
  func.func @transform_5(%arg0: i32, %arg1: i32) -> (i32, i32) {
    %c0_i32 = arith.constant 0 : i32
    %c0_i32_0 = arith.constant 0 : i32
    return %arg0, %c0_i32 : i32, i32
  }
}

</mosaic_0001>

<bundles_post_ra>
// kernel: generation_forward.1
= control target key start
LH: loop header
LB: loop body
LE: loop exit
PB: predicated region body
PF: predicated region fallthrough
CT: control target
= control target key end

     0   :  { %s1130_s18 = smov 0   ;;  %s1132_s19 = smov 0   ;;  %s1342_s0 = inlined_call_operand.vmem [shape: bf16[16,32], index: 0, kind: input, shape index: {}]   ;;  %s1343_s1 = inlined_call_operand.vmem [shape: bf16[32,256], index: 1, kind: input, shape index: {}]   ;;  %s1344_s2 = inlined_call_operand.vmem [shape: f32[1,256], index: 2, kind: input, shape index: {}]   ;;  %s1345_s3 = inlined_call_operand.vmem [shape: bf16[256,256], index: 3, kind: input, shape index: {}]   ;;  %s1346_s4 = inlined_call_operand.vmem [shape: f32[1,256], index: 4, kind: input, shape index: {}]   ;;  %s1347_s5 = inlined_call_operand.vmem [shape: f32[16,256], index: 5, kind: output, shape index: {}]  }
   0x1   :  { %s1134_s20 = smov 0   ;;  %s1136_s21 = smov 0  }
   0x2   :  { %s1138_s22 = smov 0  }
   0x3 LB: > { %s24_s23 = sadd.s32 1, %s1089_s21  ;;  %p109_p1 = scmp.ne.s32.totalorder %s1081_s19, %s1077_s18  ;;  %s1093_s22 = sphi %s1138_s22, %s15_s22   ;;  %s1089_s21 = sphi %s1136_s21, %s1351_s21   ;;  %s1085_s20 = sphi %s1134_s20, %s1350_s20   ;;  %s1081_s19 = sphi %s1132_s19, %s1349_s19   ;;  %s1077_s18 = sphi %s1130_s18, %s1348_s18  }
   0x4   : > { %p25_p0 = scmp.ge.s32.totalorder %s24_s23, 2  ;;  %p110_p2 = scmp.eq.s32.totalorder %s1093_s22, 0 }
   0x5   : > { %s102_s25 = sadd.s32 1, %s1081_s19  ;;  %p914_p5 = scmp.ge.s32.totalorder %s1093_s22, 2 }
   0x6   : > { %s1353_s23 = smov (%p25_p0, %s24_s23), 0  ;;  %p111_p3 = por %p110_p2, %p109_p1 }
   0x7   : > { %s99_s24 = ssub.s32 %s1089_s21, %s1353_s23  ;;  %202 = sbr.rel (%p914_p5) target bundleno = 39 (0x27), region = 28 }
   0x8   : > { %p100_p4 = scmp.eq.s32.totalorder %s99_s24, 0 }
   0xa   : > { %s1165_s26 = scalar_select %p100_p4, %s1081_s19, %s102_s25  }
   0xe   : > { %205 = sbr.rel (!%p111_p3) target bundleno = 39 (0x27), region = 32  ;;  %s207_s27 = sand.u32 (%p111_p3), 1, %s1081_s19  }
   0xf   : > { %s916_s28 = sshll.u32 (%p111_p3), %s1089_s21, 2  ;;  %s915_s29 = sshll.u32 (%p111_p3), %s207_s27, 7 }
  0x10   : > { %s1173_s7 = scalar_lea.vmem (%p111_p3), %s1345_s3, %s916_s28  ;;  %s1177_s8 = scalar_lea.vmem (%p111_p3), [#allocation5], %s915_s29 }
  0x11   : > { %v227_v0 = vld [vmem:[%s1173_s7] sm:$0xf] (%p111_p3)  ;;  %v229_v1 = vld [vmem:[%s1173_s7 + $0x8] sm:$0xf] (%p111_p3)  ;;  %v231_v2 = vld [vmem:[%s1173_s7 + $0x10] sm:$0xf] (%p111_p3) }
  0x12   : > { %228 = vst [vmem:[%s1177_s8] sm:$0xf] (%p111_p3), %v227_v0  ;;  %230 = vst [vmem:[%s1177_s8 + $0x4] sm:$0xf] (%p111_p3), %v229_v1  ;;  %v233_v3 = vld [vmem:[%s1173_s7 + $0x18] sm:$0xf] (%p111_p3) }
  0x13   : > { %v235_v4 = vld [vmem:[%s1173_s7 + $0x20] sm:$0xf] (%p111_p3)  ;;  %232 = vst [vmem:[%s1177_s8 + $0x8] sm:$0xf] (%p111_p3), %v231_v2  ;;  %234 = vst [vmem:[%s1177_s8 + $0xc] sm:$0xf] (%p111_p3), %v233_v3 }
  0x14   : > { %236 = vst [vmem:[%s1177_s8 + $0x10] sm:$0xf] (%p111_p3), %v235_v4  ;;  %v237_v5 = vld [vmem:[%s1173_s7 + $0x28] sm:$0xf] (%p111_p3)  ;;  %v239_v6 = vld [vmem:[%s1173_s7 + $0x30] sm:$0xf] (%p111_p3) }
  0x15   : > { %v241_v7 = vld [vmem:[%s1173_s7 + $0x38] sm:$0xf]  ;;  %238 = vst [vmem:[%s1177_s8 + $0x14] sm:$0xf] %v237_v5  ;;  %240 = vst [vmem:[%s1177_s8 + $0x18] sm:$0xf] %v239_v6 }
  0x16   : > { %242 = vst [vmem:[%s1177_s8 + $0x1c] sm:$0xf] %v241_v7  ;;  %v243_v8 = vld [vmem:[%s1173_s7 + $0x40] sm:$0xf]  ;;  %v245_v9 = vld [vmem:[%s1173_s7 + $0x48] sm:$0xf] }
  0x17   : > { %v247_v10 = vld [vmem:[%s1173_s7 + $0x50] sm:$0xf]  ;;  %244 = vst [vmem:[%s1177_s8 + $0x20] sm:$0xf] %v243_v8  ;;  %246 = vst [vmem:[%s1177_s8 + $0x24] sm:$0xf] %v245_v9 }
  0x18   : > { %248 = vst [vmem:[%s1177_s8 + $0x28] sm:$0xf] %v247_v10  ;;  %v249_v11 = vld [vmem:[%s1173_s7 + $0x58] sm:$0xf]  ;;  %v251_v12 = vld [vmem:[%s1173_s7 + $0x60] sm:$0xf] }
  0x19   : > { %v253_v13 = vld [vmem:[%s1173_s7 + $0x68] sm:$0xf]  ;;  %250 = vst [vmem:[%s1177_s8 + $0x2c] sm:$0xf] %v249_v11  ;;  %252 = vst [vmem:[%s1177_s8 + $0x30] sm:$0xf] %v251_v12 }
  0x1a   : > { %254 = vst [vmem:[%s1177_s8 + $0x34] sm:$0xf] %v253_v13  ;;  %v255_v14 = vld [vmem:[%s1173_s7 + $0x70] sm:$0xf]  ;;  %v257_v15 = vld [vmem:[%s1173_s7 + $0x78] sm:$0xf] }
  0x1b   : > { %v259_v16 = vld [vmem:[%s1173_s7 + $0x80] sm:$0xf]  ;;  %256 = vst [vmem:[%s1177_s8 + $0x38] sm:$0xf] %v255_v14  ;;  %258 = vst [vmem:[%s1177_s8 + $0x3c] sm:$0xf] %v257_v15 }
  0x1c   : > { %260 = vst [vmem:[%s1177_s8 + $0x40] sm:$0xf] %v259_v16  ;;  %v261_v17 = vld [vmem:[%s1173_s7 + $0x88] sm:$0xf]  ;;  %v263_v18 = vld [vmem:[%s1173_s7 + $0x90] sm:$0xf] }
  0x1d   : > { %v265_v19 = vld [vmem:[%s1173_s7 + $0x98] sm:$0xf]  ;;  %262 = vst [vmem:[%s1177_s8 + $0x44] sm:$0xf] %v261_v17  ;;  %264 = vst [vmem:[%s1177_s8 + $0x48] sm:$0xf] %v263_v18 }
  0x1e   : > { %266 = vst [vmem:[%s1177_s8 + $0x4c] sm:$0xf] %v265_v19  ;;  %v267_v20 = vld [vmem:[%s1173_s7 + $0xa0] sm:$0xf]  ;;  %v269_v21 = vld [vmem:[%s1173_s7 + $0xa8] sm:$0xf] }
  0x1f   : > { %v271_v22 = vld [vmem:[%s1173_s7 + $0xb0] sm:$0xf]  ;;  %268 = vst [vmem:[%s1177_s8 + $0x50] sm:$0xf] %v267_v20  ;;  %270 = vst [vmem:[%s1177_s8 + $0x54] sm:$0xf] %v269_v21 }
  0x20   : > { %272 = vst [vmem:[%s1177_s8 + $0x58] sm:$0xf] %v271_v22  ;;  %v273_v23 = vld [vmem:[%s1173_s7 + $0xb8] sm:$0xf]  ;;  %v275_v24 = vld [vmem:[%s1173_s7 + $0xc0] sm:$0xf] }
  0x21   : > { %v277_v25 = vld [vmem:[%s1173_s7 + $0xc8] sm:$0xf]  ;;  %274 = vst [vmem:[%s1177_s8 + $0x5c] sm:$0xf] %v273_v23  ;;  %276 = vst [vmem:[%s1177_s8 + $0x60] sm:$0xf] %v275_v24 }
  0x22   : > { %278 = vst [vmem:[%s1177_s8 + $0x64] sm:$0xf] %v277_v25  ;;  %v279_v26 = vld [vmem:[%s1173_s7 + $0xd0] sm:$0xf]  ;;  %v281_v27 = vld [vmem:[%s1173_s7 + $0xd8] sm:$0xf] }
  0x23   : > { %v283_v28 = vld [vmem:[%s1173_s7 + $0xe0] sm:$0xf]  ;;  %280 = vst [vmem:[%s1177_s8 + $0x68] sm:$0xf] %v279_v26  ;;  %282 = vst [vmem:[%s1177_s8 + $0x6c] sm:$0xf] %v281_v27 }
  0x24   : > { %284 = vst [vmem:[%s1177_s8 + $0x70] sm:$0xf] %v283_v28  ;;  %v285_v29 = vld [vmem:[%s1173_s7 + $0xe8] sm:$0xf]  ;;  %v287_v30 = vld [vmem:[%s1173_s7 + $0xf0] sm:$0xf] }
  0x25   : > { %v289_v31 = vld [vmem:[%s1173_s7 + $0xf8] sm:$0xf]  ;;  %286 = vst [vmem:[%s1177_s8 + $0x74] sm:$0xf] %v285_v29  ;;  %288 = vst [vmem:[%s1177_s8 + $0x78] sm:$0xf] %v287_v30 }
  0x26   : > { %290 = vst [vmem:[%s1177_s8 + $0x7c] sm:$0xf] %v289_v31 }
  0x27 PF: > { %p917_p6 = scmp.ge.s32.totalorder %s1093_s22, 1  ;;  %p382_p7 = scmp.lt.s32.totalorder %s1093_s22, 3 }
  0x29   : > { %p383_p8 = pnand %p917_p6, %p382_p7 }
  0x2a   : > { %s389_s9 = sand.u32 (!%p383_p8), 1, %s1077_s18   ;;  %p431_p9 = scmp.lt.s32.totalorder (!%p383_p8), %s1085_s20, 1 }
  0x2b   : > { %386 = sbr.rel (%p383_p8) target bundleno = 1121 (0x461), region = 77  ;;  %s918_s10 = sshll.u32 (!%p383_p8), %s389_s9, 7 }
  0x2c   : > { %s1252_s15 = scalar_lea.vmem (!%p383_p8), [#allocation5], %s918_s10  ;;  %p919_p10 = scmp.ne.s32.totalorder (!%p383_p8), %s1085_s20, 0 }
  0x32   : > { %s1246_s11 = scalar_select %p431_p9, %s1085_s20, 1 }
  0x33   : > { %445 = sbr.rel (%p919_p10) target bundleno = 282 (0x11a), region = 85  ;;  %v1017_v32 = vld [vmem:[%s1343_s1 + $0x4] ss:$8 sps:$4 sm:$0xff] (!%p919_p10)   ;;  %v1019_v33 = vld [vmem:[%s1343_s1] ss:$8 sps:$4 sm:$0xff] (!%p919_p10)   ;;  %v1095_v34 = vmov (!%p919_p10), 0   ;;  %v454_v40 = vlaneseq (!%p919_p10) }
  0x34   : > { %s433_s14 = scalar_lea.vmem %s1346_s4, %s1246_s11  ;;  %525 = vmatprep.mubr.bf16.mxu0 (!%p919_p10), %v1095_v34  ;;  %493 = vmatprep.subr.bf16.mxu0 (!%p919_p10), %v1017_v32  ;;  %v1020_v35 = vld [vmem:[%s1343_s1 + $0x14] ss:$8 sps:$4 sm:$0xff] (!%p919_p10)   ;;  %v1022_v36 = vld [vmem:[%s1343_s1 + $0x10] ss:$8 sps:$4 sm:$0xff] (!%p919_p10)   ;;  %v1023_v37 = vld [vmem:[%s1342_s0] sm:$0xff] (!%p919_p10)   ;;  %vm489_vm0 = vcmask (!%p919_p10), 261120  }
  0x35   : > { %494 = vmatpush1.bf16.msra.mxu0 (!%p919_p10), %v1019_v33  ;;  %vm544_vm1 = vcmask (!%p919_p10), 7168   ;;  %v1096_v38 = vmov (!%p919_p10), -inf   ;;  %v1097_v39 = vmov (!%p919_p10), 0.0   ;;  %v455_v41 = vshrl.u32 (!%p919_p10), %v454_v40, 7  ;;  %v452_v43 = vld [vmem:[%s1344_s2] sm:$0x3] (!%p919_p10) }
  0x36   : > { %495 = vmatprep.subr.bf16.mxu0 (!%p919_p10), %v1020_v35  ;;  %545 = vst.msk [vmem:[#allocation3] sm:$0xff] (!%p919_p10), %vm544_vm1, %v1096_v38  ;;  %546 = vst.msk [vmem:[#allocation3 + $0x8] sm:$0xff] (!%p919_p10), %vm544_vm1, %v1096_v38 }
  0x37   : > { %547 = vst.msk [vmem:[#allocation4] sm:$0xff] (!%p919_p10), %vm544_vm1, %v1097_v39  ;;  %548 = vst.msk [vmem:[#allocation4 + $0x8] sm:$0xff] (!%p919_p10), %vm544_vm1, %v1097_v39  ;;  %v456_v42 = vsub.s32 (!%p919_p10), 0, %v455_v41  ;;  %v460_v44 = vsub.s32 (!%p919_p10), 1, %v455_v41 }
  0x39   : > { %496 = vmatpush1.bf16.msra.mxu0 (!%p919_p10), %v1022_v36  ;;  %v457_v45 = vrot.slane (!%p919_p10), %v452_v43, %v456_v42  ;;  %v461_v46 = vrot.slane (!%p919_p10), %v452_v43, %v460_v44 }
  0x3c   : > { %925 = vmatmul.mubr.msk.bf16.vlgmr.msra.gmra.mrb[0].mxu0 %vm489_vm0, %v1023_v37 }
 0x10f   : > { %v527_v47 = vpop.f32.mrb[0].mxu0 }
 0x110   : > { %v528_v48 = vadd.f32 %v527_v47, %v457_v45  ;;  %v529_v49 = vpop.f32.mrb[1].mxu0 }
 0x111   : > { %v530_v50 = vadd.f32 %v529_v49, %v461_v46  ;;  %v531_v51 = vpop.f32.mrb[2].mxu0 }
 0x112   : > { %v532_v52 = vadd.f32 %v531_v51, %v457_v45  ;;  %v533_v53 = vpop.f32.mrb[3].mxu0  ;;  %v536_v55 = vmax.f32 %v528_v48, 0.0 }
 0x113   : > { %v534_v54 = vadd.f32 %v533_v53, %v461_v46  ;;  %v537_v57 = vmax.f32 %v530_v50, 0.0 }
 0x114   : > { %v538_v56 = vmax.f32 %v532_v52, 0.0 }
 0x115   : > { %v539_v58 = vmax.f32 %v534_v54, 0.0 }
 0x116   : > { %v540_v59 = vpack.c.bf16 %v538_v56, %v536_v55 }
 0x117   : > { %v541_v60 = vpack.c.bf16 %v539_v58, %v537_v57 }
 0x118   : > { %542 = vst [vmem:[#allocation2] sm:$0xff] %v540_v59 }
 0x119   : > { %543 = vst [vmem:[#allocation2 + $0x8] sm:$0xff] %v541_v60 }
 0x11a PF: > { %v1026_v61 = vld [vmem:[%s1252_s15 + $0x40] sm:$0xff]   ;;  %v1028_v63 = vld [vmem:[%s1252_s15 + $0x48] sm:$0xff]   ;;  %v1030_v1 = vld [vmem:[%s1252_s15 + $0x50] sm:$0xff]   ;;  %s943_s9 = sshll.u32 %s1085_s20, 7  ;;  %v1098_v24 = vmov 0   ;;  %vm774_vm2 = vcmask 7168  }
 0x11b   : > { %v1027_v62 = vld [vmem:[%s1252_s15] sm:$0xff]   ;;  %950 = vmatprep.subr.bf16.mxu0 %v1026_v61  ;;  %v1029_v0 = vld [vmem:[%s1252_s15 + $0x8] sm:$0xff]   ;;  %v1031_v2 = vld [vmem:[%s1252_s15 + $0x10] sm:$0xff]   ;;  %s728_s10 = sshra.s32 %s943_s9, 7  ;;  %1024 = vset.pattern.permute.xlu1 %v1098_v24  ;;  %p945_p11 = scmp.ne.s32.totalorder %s1085_s20, 1 }
 0x11c   : > { %951 = vmatpush3.bf16.msra.mxu0 %v1027_v62  ;;  %v1032_v3 = vld [vmem:[%s1252_s15 + $0x58] sm:$0xff]   ;;  %v1034_v5 = vld [vmem:[%s1252_s15 + $0x60] sm:$0xff]   ;;  %v1036_v7 = vld [vmem:[%s1252_s15 + $0x68] sm:$0xff]   ;;  %s944_s12 = sshll.u32 %s728_s10, 3  ;;  %1025 = vset.pattern.permute.xlu0 %v1098_v24  ;;  %v1099_v54 = vmov (!%p945_p11), 0  }
 0x11d   : > { %952 = vmatprep.subr.bf16.mxu0 %v1028_v63  ;;  %v1033_v4 = vld [vmem:[%s1252_s15 + $0x18] sm:$0xff]   ;;  %v1035_v6 = vld [vmem:[%s1252_s15 + $0x20] sm:$0xff]   ;;  %v1037_v9 = vld [vmem:[%s1252_s15 + $0x28] sm:$0xff]   ;;  %1050 = vset.pattern.permute.xlu0 (!%p945_p11), %v1099_v54 }
 0x11e   : > { %v1038_v10 = vld [vmem:[%s1252_s15 + $0x70] sm:$0xff]   ;;  %v1040_v12 = vld [vmem:[%s1252_s15 + $0x78] sm:$0xff]   ;;  %v734_v25 = vld [vmem:[#allocation3] sm:$0xff] }
 0x11f   : > { %v1039_v11 = vld [vmem:[%s1252_s15 + $0x30] sm:$0xff]   ;;  %v1041_v13 = vld [vmem:[%s1252_s15 + $0x38] sm:$0xff]   ;;  %s731_s15 = scalar_lea.vmem %s1347_s5, %s944_s12  ;;  %v735_v28 = vld [vmem:[#allocation3 + $0x8] sm:$0xff] }
 0x120   : > { %953 = vmatpush3.bf16.msra.mxu0 %v1029_v0  ;;  %v550_v8 = vld [vmem:[#allocation2 + $0x8] sm:$0xff]  ;;  %v549_v14 = vld [vmem:[#allocation2] sm:$0xff] }
 0x121   : > { %954 = vmatprep.subr.bf16.mxu0 %v1030_v1  ;;  %718 = vmatprep.mubr.bf16.mxu0 %v550_v8  ;;  %v926_v16 = vld [vmem:[%s433_s14] ss:$0 sm:$0xff]  ;;  %v743_v48 = vld [vmem:[#allocation4 + $0x8] sm:$0xff] }
 0x122   : > { %v742_v44 = vld [vmem:[#allocation4] sm:$0xff] }
 0x124   : > { %955 = vmatpush3.bf16.msra.mxu0 %v1031_v2 }
 0x125   : > { %956 = vmatprep.subr.bf16.mxu0 %v1032_v3 }
 0x128   : > { %957 = vmatpush3.bf16.msra.mxu0 %v1033_v4 }
 0x129   : > { %958 = vmatprep.subr.bf16.mxu0 %v1034_v5 }
 0x12c   : > { %959 = vmatpush3.bf16.msra.mxu0 %v1035_v6 }
 0x12d   : > { %960 = vmatprep.subr.bf16.mxu0 %v1036_v7 }
 0x130   : > { %961 = vmatpush3.bf16.msra.mxu0 %v1037_v9 }
 0x131   : > { %962 = vmatprep.subr.bf16.mxu0 %v1038_v10 }
 0x134   : > { %963 = vmatpush3.bf16.msra.mxu0 %v1039_v11 }
 0x135   : > { %964 = vmatprep.subr.bf16.mxu0 %v1040_v12 }
 0x138   : > { %965 = vmatpush3.bf16.msra.mxu0 %v1041_v13 }
 0x13b   : > { %719 = vmatmul.mubr.bf16.vlgmr.msra.gmra.mrb[0].mxu0 %v549_v14 }
 0x20e   : > { %v966_v15 = vpop.f32.mrb[0].mxu0 }
 0x20f   : > { %v967_v17 = vpop.f32.mrb[1].mxu0 }
 0x210   : > { %v968_v18 = vadd.f32 %v967_v17, %v966_v15  ;;  %v969_v19 = vpop.f32.mrb[2].mxu0 }
 0x211   : > { %v970_v20 = vpop.f32.mrb[3].mxu0 }
 0x212   : > { %v721_v21 = vadd.f32 %v968_v18, %v926_v16  ;;  %v971_v22 = vadd.f32 %v970_v20, %v969_v19 }
 0x214   : > { %732 = vst [vmem:[%s731_s15] sm:$0xff] %v721_v21  ;;  %v724_v23 = vadd.f32 %v971_v22, %v926_v16  ;;  %736 = vmax.xlane.f32.xlu0 %v721_v21 }
 0x216   : > { %733 = vst [vmem:[%s731_s15 + $0x10] sm:$0xff] %v724_v23 }
 0x218   : > { %738 = vmax.xlane.f32.xlu0 %v724_v23 }
 0x21d   : > { %v793_v0 = vld [vmem:[%s1347_s5] sm:$0xff] (!%p945_p11)  ;;  %v794_v1 = vld [vmem:[%s1347_s5 + $0x8] sm:$0xff] (!%p945_p11)  ;;  %v795_v5 = vld [vmem:[%s1347_s5 + $0x10] sm:$0xff] (!%p945_p11) }
 0x21e   : > { %v796_v6 = vld [vmem:[%s1347_s5 + $0x18] sm:$0xff] (!%p945_p11) }
 0x2a1   : > { %v737_v26 = vpop.xlane.xlu0 %736 }
 0x2a2   : > { %v740_v27 = vmax.f32 %v734_v25, %v737_v26 }
 0x2a4   : > { %v744_v29 = vsub.f32 %v734_v25, %v740_v27  ;;  %777 = vst.msk [vmem:[#allocation3] sm:$0xff] %vm774_vm2, %v740_v27  ;;  %754 = vperm.xlu1 %1024, %v740_v27  }
 0x2a5   : > { %v739_v30 = vpop.xlane.xlu0 %738 }
 0x2a6   : > { %v741_v31 = vmax.f32 %v735_v28, %v739_v30  ;;  %v746_v41 = vmul.f32 1.442695, %v744_v29 }
 0x2a8   : > { %v745_v32 = vsub.f32 %v735_v28, %v741_v31  ;;  %778 = vst.msk [vmem:[#allocation3 + $0x8] sm:$0xff] %vm774_vm2, %v741_v31  ;;  %759 = vperm.xlu1 %1024, %v741_v31  }
 0x2aa   : > { %v748_v42 = vmul.f32 1.442695, %v745_v32 }
 0x2ab   : > { %v783_v57 = vld [vmem:[#allocation3] sm:$0xff] (!%p945_p11) }
 0x2af   : > { %v784_v60 = vld [vmem:[#allocation3 + $0x8] sm:$0xff] (!%p945_p11) }
 0x323   : > { %v755_v33 = vpop.permute.xlu1 %754 }
 0x324   : > { %v762_v34 = vsub.f32 %v721_v21, %v755_v33 }
 0x326   : > { %v764_v35 = vmul.f32 1.442695, %v762_v34 }
 0x327   : > { %v760_v36 = vpop.permute.xlu1 %759 }
 0x328   : > { %1042 = vpow2.f32 %v764_v35  ;;  %v763_v37 = vsub.f32 %v724_v23, %v760_v36 }
 0x32a   : > { %v766_v38 = vmul.f32 1.442695, %v763_v37 }
 0x32c   : > { %1044 = vpow2.f32 %v766_v38 }
 0x32d   : > { %1046 = vpow2.f32 %v746_v41 }
 0x32e   : > { %1048 = vpow2.f32 %v748_v42 }
 0x332   : > { %v1043_v39 = vpop.eup %1042 }
 0x333   : > { %768 = vadd.xlane.f32.xlu0 %v1043_v39 }
 0x336   : > { %v1045_v40 = vpop.eup %1044 }
 0x337   : > { %770 = vadd.xlane.f32.xlu1 %v1045_v40  ;;  %v1047_v43 = vpop.eup %1046 }
 0x338   : > { %v750_v45 = vmul.f32 %v1047_v43, %v742_v44  ;;  %v1049_v46 = vpop.eup %1048 }
 0x339   : > { %v751_v50 = vmul.f32 %v1049_v46, %v743_v48 }
 0x3c0   : > { %v769_v47 = vpop.xlane.xlu0 %768 }
 0x3c1   : > { %v772_v49 = vadd.f32 %v769_v47, %v750_v45  ;;  %782 = sbr.rel (%p945_p11) target bundleno = 1121 (0x461), region = 89 }
 0x3c3   : > { %775 = vst.msk [vmem:[#allocation4] sm:$0xff] %vm774_vm2, %v772_v49 }
 0x3c4   : > { %v771_v51 = vpop.xlane.xlu1 %770 }
 0x3c5   : > { %v773_v52 = vadd.f32 %v771_v51, %v751_v50 }
 0x3c7   : > { %776 = vst.msk [vmem:[#allocation4 + $0x8] sm:$0xff] %vm774_vm2, %v773_v52 }
 0x3ca   : > { %v785_v53 = vld [vmem:[#allocation4] sm:$0xff] }
 0x3cb   : > { %1051 = vlog2.f32 %v785_v53 }
 0x3ce   : > { %v786_v55 = vld [vmem:[#allocation4 + $0x8] sm:$0xff] }
 0x3cf   : > { %1053 = vlog2.f32 %v786_v55 }
 0x3d5   : > { %v1052_v56 = vpop.eup %1051 }
 0x3d6   : > { %v788_v59 = vmul.f32 0.6931472, %v1052_v56 }
 0x3d8   : > { %v791_v62 = vadd.f32 %v788_v59, %v783_v57 }
 0x3d9   : > { %v1054_v58 = vpop.eup %1053 }
 0x3da   : > { %v790_v61 = vmul.f32 0.6931472, %v1054_v58  ;;  %799 = vperm.xlu0 %1050, %v791_v62  }
 0x3dc   : > { %v792_v63 = vadd.f32 %v790_v61, %v784_v60 }
 0x3de   : > { %804 = vperm.xlu0 %1050, %v792_v63  }
 0x459   : > { %v800_v2 = vpop.permute.xlu0 %799 }
 0x45a   : > { %v807_v3 = vsub.f32 %v793_v0, %v800_v2  ;;  %v808_v4 = vsub.f32 %v794_v1, %v800_v2 }
 0x45c   : > { %811 = vst [vmem:[%s1347_s5] sm:$0xff] %v807_v3  ;;  %812 = vst [vmem:[%s1347_s5 + $0x8] sm:$0xff] %v808_v4 }
 0x45d   : > { %v805_v7 = vpop.permute.xlu0 %804 }
 0x45e   : > { %v809_v8 = vsub.f32 %v795_v5, %v805_v7  ;;  %v810_v9 = vsub.f32 %v796_v6, %v805_v7 }
 0x460   : > { %813 = vst [vmem:[%s1347_s5 + $0x10] sm:$0xff] %v809_v8  ;;  %814 = vst [vmem:[%s1347_s5 + $0x18] sm:$0xff] %v810_v9 }
 0x461 PF: > { %s15_s22 = sadd.s32 1, %s1093_s22   ;;  %s1348_s18 = smov %s1081_s19 }
 0x462   : > { %p12_p12 = scmp.ge.s32.totalorder %s15_s22, 4   ;;  %s1349_s19 = smov %s1165_s26 }
 0x463   : > { %s1350_s20 = smov %s1089_s21  ;;  %s1351_s21 = smov %s1353_s23 }
 0x464   :  { %14 = sbr.rel (!%p12_p12) target bundleno = 3 (0x3), region = 131 }

</bundles_post_ra>
